<compile_context>
chip_gen: v5e
topology: v5e:2x2
jax: 0.10.0
libtpu: 0.0.40
codegen_flags: <defaults>
</compile_context>

<pallas_src>
import functools

import jax
import jax.numpy as jnp
from jax import lax
from jax.experimental import pallas as pl
from jax.experimental.pallas import tpu as pltpu


def _round_up(x, m):
    return ((x + m - 1) // m) * m


# --------------------------------------------------------------------------- #
# Kernel
# --------------------------------------------------------------------------- #
def tcbp_kernel(p1_ref, p2_ref, w1_ref, w2_ref, wc_ref, ws_ref,
                out_ref, nrm_ref, pr_sc, q_sc):
    """Grid = (batch_tiles, column_tiles).  Per batch tile:

    j == 0 : forward pass — fused (count-sketch @ DFT) matmul per stream, complex
             elementwise product into VMEM scratch (pr, q), zero the norm output.
    every j: inverse DFT for one output-column tile (two matmuls, no concat),
             signed sqrt, accumulate squared L2 norm into the resident nrm output.

    p1_ref/p2_ref : [tb, C*T]      pooled activations (compute dtype)
    w1_ref/w2_ref : [C*T, 2*Dp]    sketch @ [cosDFT | sinDFT]   (resident)
    wc_ref/ws_ref : [Dp, tn]       inverse-DFT cos / sin column tile
    out_ref       : [tb, tn]       signed-sqrt output tile (f32, un-normalized)
    nrm_ref       : [tb, 1]        squared L2 norm accumulator (resident over j)
    pr_sc/q_sc    : [tb, Dp]       complex-product scratch (compute dtype)
    """
    j = pl.program_id(1)
    dp = pr_sc.shape[1]

    @pl.when(j == 0)
    def _():
        # Fused count-sketch + forward DFT: one matmul per stream.
        #   f = [y @ cos | y @ sin],  DFT(y) = u - i*v
        f1 = jnp.dot(p1_ref[...], w1_ref[...], preferred_element_type=jnp.float32)
        f2 = jnp.dot(p2_ref[...], w2_ref[...], preferred_element_type=jnp.float32)
        u1, v1 = f1[:, :dp], f1[:, dp:]
        u2, v2 = f2[:, :dp], f2[:, dp:]
        # (u1 - i v1)(u2 - i v2) = pr - i*q   (elementwise, VPU, f32)
        pr_sc[...] = (u1 * u2 - v1 * v2).astype(pr_sc.dtype)
        q_sc[...] = (u1 * v2 + v1 * u2).astype(q_sc.dtype)
        nrm_ref[...] = jnp.zeros_like(nrm_ref)

    # Inverse DFT * D for this column tile:  out = pr @ cos + q @ sin
    out = (jnp.dot(pr_sc[...], wc_ref[...], preferred_element_type=jnp.float32)
           + jnp.dot(q_sc[...], ws_ref[...], preferred_element_type=jnp.float32))

    # Signed square root: out * rsqrt(|out| + eps)  (zero-padded lanes stay 0).
    out = out * lax.rsqrt(jnp.abs(out) + 1e-12)

    # Accumulate squared L2 norm across column tiles (resident output block).
    nrm_ref[...] += jnp.sum(out * out, axis=-1, keepdims=True)
    out_ref[...] = out.astype(out_ref.dtype)


# --------------------------------------------------------------------------- #
# Operand precompute (off the hot path)
# --------------------------------------------------------------------------- #
def tcbp_precompute(sketch1, sketch2, output_dim, compute_dtype=jnp.bfloat16):
    """Build fused (sketch @ DFT) forward operands and the inverse-DFT cos/sin
    operands ONCE.  Columns are zero-padded to a multiple of 128 so every kernel
    intermediate / store is lane-dense (exact zeros survive signed-sqrt + norm)."""
    # TODO(synk): dense [D, D] cos/sin f32 matrices are a trace-time footprint
    # hazard for very large D (~16k); build them blockwise / on device if needed.
    d = output_dim
    dp = _round_up(d, 128)
    k = jnp.arange(d, dtype=jnp.float32)
    ang = (2.0 * jnp.pi / d) * (k[:, None] * k[None, :])
    cos_m = jnp.cos(ang)
    sin_m = jnp.sin(ang)

    def fuse_forward(sk):
        sk = sk.astype(jnp.float32)
        w = jnp.zeros((sk.shape[0], 2 * dp), jnp.float32)
        w = w.at[:, :d].set(sk @ cos_m)
        w = w.at[:, dp:dp + d].set(sk @ sin_m)
        return w.astype(compute_dtype)

    w1 = fuse_forward(sketch1)                       # [C*T, 2*Dp]
    w2 = fuse_forward(sketch2)
    wc = jnp.zeros((dp, dp), jnp.float32).at[:d, :d].set(cos_m).astype(compute_dtype)
    ws = jnp.zeros((dp, dp), jnp.float32).at[:d, :d].set(sin_m).astype(compute_dtype)
    return w1, w2, wc, ws


# --------------------------------------------------------------------------- #
# Tiling / VMEM budgeting
# --------------------------------------------------------------------------- #
def _vmem_capacity_bytes():
    try:
        return int(pltpu.get_tpu_info().vmem_capacity_bytes)
    except Exception:
        return 128 * 1024 * 1024


def _select_tiles(b, ct, dp, w_bytes, vmem_budget, prefer_split_batch):
    """Pick (batch tile, output-column tile) so everything fits the VMEM budget."""
    bpad8 = _round_up(max(b, 1), 8)
    tb = min(256, bpad8)                      # MXU-filling M target

    tn_cands = [c for c in (dp, 4096, 2048, 1024, 512, 256, 128)
                if c <= dp and dp % c == 0]
    seen = set()
    tn_cands = [c for c in tn_cands if not (c in seen or seen.add(c))]

    def cost(tb_, tn_):
        weights_fwd = 2 * ct * (2 * dp) * w_bytes      # w1, w2 (single-buffered)
        winv_tiles = 2 * 2 * dp * tn_ * w_bytes        # cos/sin tiles (2 bufs)
        p_tiles = 2 * 2 * tb_ * ct * w_bytes           # p1, p2 (2 bufs)
        out_tiles = 2 * (tb_ * tn_ * 4 + tb_ * 4)      # out + nrm (2 bufs)
        scratch = 2 * tb_ * dp * w_bytes               # pr, q scratch
        fwd_tmp = 2 * tb_ * (2 * dp) * 4               # f1/f2 f32 transients (j==0)
        return weights_fwd + winv_tiles + p_tiles + out_tiles + scratch + fwd_tmp

    tn = tn_cands[-1]
    while True:
        found = next((c for c in tn_cands if cost(tb, c) <= vmem_budget), None)
        if found is not None:
            tn = found
            break
        if tb <= 8:
            tn = tn_cands[-1]
            break
        tb = max(8, _round_up(tb // 2, 8))

    # v7x has 2 TensorCores per chip: keep >= 2 tiles on the "parallel" batch axis.
    if prefer_split_batch and bpad8 > 8 and bpad8 // tb < 2:
        tb = max(8, _round_up((bpad8 + 1) // 2, 8))

    return tb, tn


# --------------------------------------------------------------------------- #
# Forward wrapper
# --------------------------------------------------------------------------- #
@functools.partial(jax.jit, static_argnames=("output_dim",))
def tcbp_forward(x1, x2, w1, w2, wc, ws, *, output_dim):
    b = x1.shape[0]
    ct = w1.shape[0]
    dp = wc.shape[0]
    cdt = w1.dtype

    # avg_pool3d(kernel=[1, X, Y]) over the full spatial window == mean over (X, Y).
    # Hoisted into XLA: the raw 5-D activations are streamed once from HBM in their
    # native dtype (f32 accumulation via the reduce dtype) — no transpose copy.
    p1 = jnp.mean(x1, axis=(3, 4), dtype=jnp.float32).reshape(b, -1).astype(cdt)
    p2 = jnp.mean(x2, axis=(3, 4), dtype=jnp.float32).reshape(b, -1).astype(cdt)

    w_bytes = jnp.dtype(cdt).itemsize
    vmem_cap = _vmem_capacity_bytes()
    vmem_limit = int(min(vmem_cap * 0.80, 100 * 1024 * 1024))   # ~51 MiB v7x, 100 MiB v5e/v6e
    tb, tn = _select_tiles(b, ct, dp, w_bytes,
                           vmem_budget=int(vmem_limit * 0.85),
                           prefer_split_batch=(vmem_cap <= 64 * 1024 * 1024))

    bpad = _round_up(b, tb)
    if bpad != b:
        p1 = jnp.pad(p1, ((0, bpad - b), (0, 0)))
        p2 = jnp.pad(p2, ((0, bpad - b), (0, 0)))

    grid = (bpad // tb, dp // tn)
    n_col = grid[1]

    def spec(shape, index_map, mode=None):
        if mode is None:
            return pl.BlockSpec(shape, index_map)
        return pl.BlockSpec(shape, index_map, pipeline_mode=mode)

    resident = pl.Buffered(1)                         # block index never changes
    col_mode = pl.Buffered(1) if n_col == 1 else None

    in_specs = [
        spec((tb, ct), lambda i, j: (i, 0)),
        spec((tb, ct), lambda i, j: (i, 0)),
        spec((ct, 2 * dp), lambda i, j: (0, 0), resident),
        spec((ct, 2 * dp), lambda i, j: (0, 0), resident),
        spec((dp, tn), lambda i, j: (0, j), col_mode),
        spec((dp, tn), lambda i, j: (0, j), col_mode),
    ]
    out_specs = [
        spec((tb, tn), lambda i, j: (i, j)),
        spec((tb, 1), lambda i, j: (i, 0)),
    ]

    out, nrm = pl.pallas_call(
        tcbp_kernel,
        out_shape=(jax.ShapeDtypeStruct((bpad, dp), jnp.float32),
                   jax.ShapeDtypeStruct((bpad, 1), jnp.float32)),
        grid=grid,
        in_specs=in_specs,
        out_specs=out_specs,
        scratch_shapes=[pltpu.VMEM((tb, dp), cdt),
                        pltpu.VMEM((tb, dp), cdt)],
        compiler_params=pltpu.CompilerParams(
            dimension_semantics=("parallel", "arbitrary"),
            vmem_limit_bytes=vmem_limit,
        ),
    )(p1, p2, w1, w2, wc, ws)
    # TODO(synk): for output dims where even the [C*T, 2*Dp] forward operand exceeds
    # VMEM, add a third grid axis tiling the frequency-bin axis (the complex product
    # is elementwise per bin; the inverse DFT then accumulates over that axis).

    # Tiny follow-up op: F.normalize(p=2, dim=1, eps=1e-12).  The zero-padded lanes
    # contribute exactly 0 to nrm, so nrm is the norm over the real output_dim cols.
    out = out[:b, :output_dim] * lax.rsqrt(jnp.maximum(nrm[:b], 1e-24))
    return out


# --------------------------------------------------------------------------- #
# Reference / test harness
# --------------------------------------------------------------------------- #
def make_sketch_matrix(key, input_dim, temporal_window, output_dim):
    """Deterministic stand-in for the module's random count-sketch parameters."""
    kh, ks = jax.random.split(key)
    # rand_h: one bucket per channel, repeated T times (channel-major, time-minor)
    h = jax.random.randint(kh, (input_dim,), 0, output_dim)
    h_full = jnp.repeat(h, temporal_window)                            # [C*T]
    # rand_s: independent +/-1 per (channel, time)
    s_full = (2 * jax.random.randint(ks, (input_dim * temporal_window,), 0, 2) - 1)
    sketch = jax.nn.one_hot(h_full, output_dim, dtype=jnp.float32) \
        * s_full[:, None].astype(jnp.float32)                          # [C*T, D]
    return sketch


def tcbp_reference(x1, x2, sketch1, sketch2, output_dim):
    """Pure-JAX reference (mirrors the PyTorch forward with jnp.fft)."""
    b = x1.shape[0]
    p1 = x1.reshape(b, -1, x1.shape[-2] * x1.shape[-1]).mean(-1)
    p2 = x2.reshape(b, -1, x2.shape[-2] * x2.shape[-1]).mean(-1)
    y1 = p1 @ sketch1
    y2 = p2 @ sketch2
    f1 = jnp.fft.rfft(y1, axis=1)
    f2 = jnp.fft.rfft(y2, axis=1)
    out = jnp.fft.irfft(f1 * f2, n=output_dim, axis=1) * output_dim
    out = jnp.sign(out) * jnp.sqrt(jnp.abs(out) + 1e-12)
    return out / jnp.maximum(jnp.linalg.norm(out, axis=1, keepdims=True), 1e-12)


if __name__ == "__main__":
    # small shapes consistent with the module: [B, C, T, X, Y]
    B, C, T, X, Y = 2, 8, 4, 7, 7
    D = 32

    key = jax.random.PRNGKey(0)
    k_s1, k_s2, k_x1, k_x2 = jax.random.split(key, 4)

    sketch1 = make_sketch_matrix(k_s1, C, T, D)   # [C*T, D]
    sketch2 = make_sketch_matrix(k_s2, C, T, D)   # [C*T, D]

    x1 = jax.random.uniform(k_x1, (B, C, T, X, Y), dtype=jnp.float32)
    x2 = jax.random.uniform(k_x2, (B, C, T, X, Y), dtype=jnp.float32)

    ref = jax.block_until_ready(tcbp_reference(x1, x2, sketch1, sketch2, D))

    # --- f32 MXU-operand path: strict check against the FFT reference ---
    w1, w2, wc, ws = tcbp_precompute(sketch1, sketch2, D, compute_dtype=jnp.float32)
    out_f32 = jax.block_until_ready(tcbp_forward(x1, x2, w1, w2, wc, ws, output_dim=D))
    assert out_f32.shape == (B, D), out_f32.shape
    assert jnp.allclose(out_f32, ref, atol=1e-2, rtol=1e-2), \
        float(jnp.max(jnp.abs(out_f32 - ref)))

    # --- bf16 MXU-operand fast path (v6e/v7x): looser check, since the signed sqrt
    #     amplifies low-precision error on near-zero correlation bins ---
    w1b, w2b, wcb, wsb = tcbp_precompute(sketch1, sketch2, D, compute_dtype=jnp.bfloat16)
    out_bf = jax.block_until_ready(tcbp_forward(x1, x2, w1b, w2b, wcb, wsb, output_dim=D))
    assert out_bf.shape == (B, D), out_bf.shape
    assert bool(jnp.all(jnp.isfinite(out_bf)))
    assert float(jnp.max(jnp.abs(out_bf - ref))) < 0.2, \
        float(jnp.max(jnp.abs(out_bf - ref)))

    print("KERNEL_OK")
</pallas_src>

<mosaic_0001>
module attributes {stable_mosaic.version = 11 : i64} {
  func.func @tcbp_kernel(%arg0: i32, %arg1: i32, %arg2: memref<8x32xf32, #tpu.memory_space<vmem>>, %arg3: memref<8x32xf32, #tpu.memory_space<vmem>>, %arg4: memref<32x256xf32, #tpu.memory_space<vmem>>, %arg5: memref<32x256xf32, #tpu.memory_space<vmem>>, %arg6: memref<128x128xf32, #tpu.memory_space<vmem>>, %arg7: memref<128x128xf32, #tpu.memory_space<vmem>>, %arg8: memref<8x128xf32, #tpu.memory_space<vmem>>, %arg9: memref<8x1xf32, #tpu.memory_space<vmem>>, %arg10: memref<8x128xf32, #tpu.memory_space<vmem>>, %arg11: memref<8x128xf32, #tpu.memory_space<vmem>>) attributes {dimension_semantics = [#tpu.dimension_semantics<parallel>, #tpu.dimension_semantics<arbitrary>], iteration_bounds = array<i64: 1, 1>, scalar_prefetch = 0 : i64, scratch_operands = 2 : i64, tpu.core_type = #tpu.core_type<tc>, window_params = [{transform_indices = @transform_0, window_bounds = array<i64: 8, 32>}, {transform_indices = @transform_1, window_bounds = array<i64: 8, 32>}, {pipeline_mode = #tpu.pipeline_mode<synchronous>, transform_indices = @transform_2, window_bounds = array<i64: 32, 256>}, {pipeline_mode = #tpu.pipeline_mode<synchronous>, transform_indices = @transform_3, window_bounds = array<i64: 32, 256>}, {pipeline_mode = #tpu.pipeline_mode<synchronous>, transform_indices = @transform_4, window_bounds = array<i64: 128, 128>}, {pipeline_mode = #tpu.pipeline_mode<synchronous>, transform_indices = @transform_5, window_bounds = array<i64: 128, 128>}, {transform_indices = @transform_6, window_bounds = array<i64: 8, 128>}, {transform_indices = @transform_7, window_bounds = array<i64: 8, 1>}]} {
    %c0_i32 = arith.constant 0 : i32
    %0 = arith.cmpi eq, %arg1, %c0_i32 : i32
    %1 = arith.extui %0 : i1 to i32
    %c0_i32_0 = arith.constant 0 : i32
    %2 = arith.cmpi ne, %1, %c0_i32_0 : i32
    scf.if %2 {
      %c0_17 = arith.constant 0 : index
      %c0_18 = arith.constant 0 : index
      %22 = vector.load %arg2[%c0_17, %c0_18] : memref<8x32xf32, #tpu.memory_space<vmem>>, vector<8x32xf32>
      %c0_19 = arith.constant 0 : index
      %c0_20 = arith.constant 0 : index
      %23 = vector.load %arg4[%c0_19, %c0_20] : memref<32x256xf32, #tpu.memory_space<vmem>>, vector<32x256xf32>
      %cst_21 = arith.constant dense<0.000000e+00> : vector<8x256xf32>
      %24 = tpu.matmul %22, %23, %cst_21 {dimension_numbers = #tpu.dot_dimension_numbers<[1], [0], [0], [1], [0, 0, 1, 1], [], []>} : vector<8x32xf32>, vector<32x256xf32>, vector<8x256xf32> -> vector<8x256xf32>
      %c0_22 = arith.constant 0 : index
      %c0_23 = arith.constant 0 : index
      %25 = vector.load %arg3[%c0_22, %c0_23] : memref<8x32xf32, #tpu.memory_space<vmem>>, vector<8x32xf32>
      %c0_24 = arith.constant 0 : index
      %c0_25 = arith.constant 0 : index
      %26 = vector.load %arg5[%c0_24, %c0_25] : memref<32x256xf32, #tpu.memory_space<vmem>>, vector<32x256xf32>
      %cst_26 = arith.constant dense<0.000000e+00> : vector<8x256xf32>
      %27 = tpu.matmul %25, %26, %cst_26 {dimension_numbers = #tpu.dot_dimension_numbers<[1], [0], [0], [1], [0, 0, 1, 1], [], []>} : vector<8x32xf32>, vector<32x256xf32>, vector<8x256xf32> -> vector<8x256xf32>
      %28 = vector.extract_strided_slice %24 {offsets = [0, 0], sizes = [8, 128], strides = [1, 1]} : vector<8x256xf32> to vector<8x128xf32>
      %29 = vector.extract_strided_slice %24 {offsets = [0, 128], sizes = [8, 128], strides = [1, 1]} : vector<8x256xf32> to vector<8x128xf32>
      %30 = vector.extract_strided_slice %27 {offsets = [0, 0], sizes = [8, 128], strides = [1, 1]} : vector<8x256xf32> to vector<8x128xf32>
      %31 = vector.extract_strided_slice %27 {offsets = [0, 128], sizes = [8, 128], strides = [1, 1]} : vector<8x256xf32> to vector<8x128xf32>
      %32 = arith.mulf %28, %30 : vector<8x128xf32>
      %33 = arith.mulf %29, %31 : vector<8x128xf32>
      %34 = arith.subf %32, %33 : vector<8x128xf32>
      %c0_27 = arith.constant 0 : index
      %c0_28 = arith.constant 0 : index
      %35 = vector.load %arg10[%c0_27, %c0_28] : memref<8x128xf32, #tpu.memory_space<vmem>>, vector<8x128xf32>
      tpu.vector_store %arg10[%c0_27, %c0_28], %34 {strides = array<i32>} : memref<8x128xf32, #tpu.memory_space<vmem>>, vector<8x128xf32>,
      %36 = arith.mulf %28, %31 : vector<8x128xf32>
      %37 = arith.mulf %29, %30 : vector<8x128xf32>
      %38 = arith.addf %36, %37 : vector<8x128xf32>
      %c0_29 = arith.constant 0 : index
      %c0_30 = arith.constant 0 : index
      %39 = vector.load %arg11[%c0_29, %c0_30] : memref<8x128xf32, #tpu.memory_space<vmem>>, vector<8x128xf32>
      tpu.vector_store %arg11[%c0_29, %c0_30], %38 {strides = array<i32>} : memref<8x128xf32, #tpu.memory_space<vmem>>, vector<8x128xf32>,
      %cst_31 = arith.constant 0.000000e+00 : f32
      %40 = vector.broadcast %cst_31 : f32 to vector<8x1xf32>
      %c0_32 = arith.constant 0 : index
      %c0_33 = arith.constant 0 : index
      %41 = vector.load %arg9[%c0_32, %c0_33] : memref<8x1xf32, #tpu.memory_space<vmem>>, vector<8x1xf32>
      tpu.vector_store %arg9[%c0_32, %c0_33], %40 {strides = array<i32>} : memref<8x1xf32, #tpu.memory_space<vmem>>, vector<8x1xf32>,
    } else {
    }
    %c0 = arith.constant 0 : index
    %c0_1 = arith.constant 0 : index
    %3 = vector.load %arg10[%c0, %c0_1] : memref<8x128xf32, #tpu.memory_space<vmem>>, vector<8x128xf32>
    %c0_2 = arith.constant 0 : index
    %c0_3 = arith.constant 0 : index
    %4 = vector.load %arg6[%c0_2, %c0_3] : memref<128x128xf32, #tpu.memory_space<vmem>>, vector<128x128xf32>
    %cst = arith.constant dense<0.000000e+00> : vector<8x128xf32>
    %5 = tpu.matmul %3, %4, %cst {dimension_numbers = #tpu.dot_dimension_numbers<[1], [0], [0], [1], [0, 0, 1, 1], [], []>} : vector<8x128xf32>, vector<128x128xf32>, vector<8x128xf32> -> vector<8x128xf32>
    %c0_4 = arith.constant 0 : index
    %c0_5 = arith.constant 0 : index
    %6 = vector.load %arg11[%c0_4, %c0_5] : memref<8x128xf32, #tpu.memory_space<vmem>>, vector<8x128xf32>
    %c0_6 = arith.constant 0 : index
    %c0_7 = arith.constant 0 : index
    %7 = vector.load %arg7[%c0_6, %c0_7] : memref<128x128xf32, #tpu.memory_space<vmem>>, vector<128x128xf32>
    %cst_8 = arith.constant dense<0.000000e+00> : vector<8x128xf32>
    %8 = tpu.matmul %6, %7, %cst_8 {dimension_numbers = #tpu.dot_dimension_numbers<[1], [0], [0], [1], [0, 0, 1, 1], [], []>} : vector<8x128xf32>, vector<128x128xf32>, vector<8x128xf32> -> vector<8x128xf32>
    %9 = arith.addf %5, %8 : vector<8x128xf32>
    %10 = math.absf %9 : vector<8x128xf32>
    %cst_9 = arith.constant 9.99999996E-13 : f32
    %11 = vector.broadcast %cst_9 : f32 to vector<8x128xf32>
    %12 = arith.addf %10, %11 : vector<8x128xf32>
    %13 = math.rsqrt %12 : vector<8x128xf32>
    %14 = arith.mulf %9, %13 : vector<8x128xf32>
    %c0_10 = arith.constant 0 : index
    %c0_11 = arith.constant 0 : index
    %15 = vector.load %arg9[%c0_10, %c0_11] : memref<8x1xf32, #tpu.memory_space<vmem>>, vector<8x1xf32>
    %16 = arith.mulf %14, %14 : vector<8x128xf32>
    %cst_12 = arith.constant dense<0.000000e+00> : vector<8xf32>
    %17 = vector.multi_reduction <add>, %16, %cst_12 [1] : vector<8x128xf32> to vector<8xf32>
    %18 = vector.shape_cast %17 : vector<8xf32> to vector<8x1xf32>
    %19 = arith.addf %15, %18 : vector<8x1xf32>
    %c0_13 = arith.constant 0 : index
    %c0_14 = arith.constant 0 : index
    %20 = vector.load %arg9[%c0_13, %c0_14] : memref<8x1xf32, #tpu.memory_space<vmem>>, vector<8x1xf32>
    tpu.vector_store %arg9[%c0_13, %c0_14], %19 {strides = array<i32>} : memref<8x1xf32, #tpu.memory_space<vmem>>, vector<8x1xf32>,
    %c0_15 = arith.constant 0 : index
    %c0_16 = arith.constant 0 : index
    %21 = vector.load %arg8[%c0_15, %c0_16] : memref<8x128xf32, #tpu.memory_space<vmem>>, vector<8x128xf32>
    tpu.vector_store %arg8[%c0_15, %c0_16], %14 {strides = array<i32>} : memref<8x128xf32, #tpu.memory_space<vmem>>, vector<8x128xf32>,
    return
  }
  func.func @transform_0(%arg0: i32, %arg1: i32) -> (i32, i32) {
    %c0_i32 = arith.constant 0 : i32
    %c0_i32_0 = arith.constant 0 : i32
    return %arg0, %c0_i32 : i32, i32
  }
  func.func @transform_1(%arg0: i32, %arg1: i32) -> (i32, i32) {
    %c0_i32 = arith.constant 0 : i32
    %c0_i32_0 = arith.constant 0 : i32
    return %arg0, %c0_i32 : i32, i32
  }
  func.func @transform_2(%arg0: i32, %arg1: i32) -> (i32, i32) {
    %c0_i32 = arith.constant 0 : i32
    %c0_i32_0 = arith.constant 0 : i32
    %c0_i32_1 = arith.constant 0 : i32
    return %c0_i32, %c0_i32_0 : i32, i32
  }
  func.func @transform_3(%arg0: i32, %arg1: i32) -> (i32, i32) {
    %c0_i32 = arith.constant 0 : i32
    %c0_i32_0 = arith.constant 0 : i32
    %c0_i32_1 = arith.constant 0 : i32
    return %c0_i32, %c0_i32_0 : i32, i32
  }
  func.func @transform_4(%arg0: i32, %arg1: i32) -> (i32, i32) {
    %c0_i32 = arith.constant 0 : i32
    %c0_i32_0 = arith.constant 0 : i32
    return %c0_i32, %arg1 : i32, i32
  }
  func.func @transform_5(%arg0: i32, %arg1: i32) -> (i32, i32) {
    %c0_i32 = arith.constant 0 : i32
    %c0_i32_0 = arith.constant 0 : i32
    return %c0_i32, %arg1 : i32, i32
  }
  func.func @transform_6(%arg0: i32, %arg1: i32) -> (i32, i32) {
    %c0_i32 = arith.constant 0 : i32
    return %arg0, %arg1 : i32, i32
  }
  func.func @transform_7(%arg0: i32, %arg1: i32) -> (i32, i32) {
    %c0_i32 = arith.constant 0 : i32
    %c0_i32_0 = arith.constant 0 : i32
    return %arg0, %c0_i32 : i32, i32
  }
}

</mosaic_0001>

<bundles_post_ra>
// kernel: tcbp_forward.1
= control target key start
LH: loop header
LB: loop body
LE: loop exit
PB: predicated region body
PF: predicated region fallthrough
CT: control target
= control target key end

     0   :  { %vm38_vm0 = vcmask 261120   ;;  %vm142_vm1 = vcmask 7168   ;;  %v254_v60 = vmov 0.0   ;;  %s463_s2 = inlined_call_operand.vmem [shape: f32[32,256], index: 2, kind: input, shape index: {}]   ;;  %s464_s0 = inlined_call_operand.vmem [shape: f32[8,32], index: 0, kind: input, shape index: {}]   ;;  %s465_s3 = inlined_call_operand.vmem [shape: f32[32,256], index: 3, kind: input, shape index: {}]   ;;  %s466_s5 = inlined_call_operand.vmem [shape: f32[128,128], index: 5, kind: input, shape index: {}]   ;;  %s467_s4 = inlined_call_operand.vmem [shape: f32[128,128], index: 4, kind: input, shape index: {}]   ;;  %s468_s1 = inlined_call_operand.vmem [shape: f32[8,32], index: 1, kind: input, shape index: {}]   ;;  %s469_s7 = inlined_call_operand.vmem [shape: f32[8,1], index: 7, kind: output, shape index: {1}]   ;;  %s470_s6 = inlined_call_operand.vmem [shape: f32[8,128], index: 6, kind: output, shape index: {0}]  }
   0x1   :  { %v36_v0 = vld [vmem:[%s463_s2 + $0x30] sm:$0xff]  ;;  %v37_v1 = vld [vmem:[%s463_s2 + $0x38] sm:$0xff]  ;;  %v34_v2 = vld [vmem:[%s463_s2 + $0x20] sm:$0xff]  ;;  %143 = vst.msk [vmem:[%s469_s7] sm:$0xff] %vm142_vm1, %v254_v60 }
   0x2   :  { %54 = vmatpush.msra.mxu2 %v36_v0  ;;  %74 = vmatpush.msra.mxu3 %v37_v1  ;;  %v35_v3 = vld [vmem:[%s463_s2 + $0x28] sm:$0xff]  ;;  %v32_v4 = vld [vmem:[%s463_s2 + $0x10] sm:$0xff]  ;;  %v33_v5 = vld [vmem:[%s463_s2 + $0x18] sm:$0xff] }
   0x3   :  { %v30_v6 = vld [vmem:[%s463_s2] sm:$0xff]  ;;  %v31_v7 = vld [vmem:[%s463_s2 + $0x8] sm:$0xff]  ;;  %v89_v9 = vld [vmem:[%s465_s3 + $0x30] sm:$0xff] }
   0x4   :  { %55 = vmatpush.msra.mxu2 %v34_v2  ;;  %75 = vmatpush.msra.mxu3 %v35_v3  ;;  %v29_v8 = vld [vmem:[%s464_s0] sm:$0xff]  ;;  %v90_v10 = vld [vmem:[%s465_s3 + $0x38] sm:$0xff]  ;;  %v88_v14 = vld [vmem:[%s465_s3 + $0x28] sm:$0xff] }
   0x5   :  { %v177_v11 = vld [vmem:[%s466_s5 + $0x78] sm:$0xff]  ;;  %v87_v13 = vld [vmem:[%s465_s3 + $0x20] sm:$0xff]  ;;  %v176_v15 = vld [vmem:[%s466_s5 + $0x70] sm:$0xff] }
   0x6   :  { %56 = vmatpush.msra.mxu2 %v32_v4  ;;  %76 = vmatpush.msra.mxu3 %v33_v5  ;;  %v160_v12 = vld [vmem:[%s467_s4 + $0x78] sm:$0xff]  ;;  %v159_v16 = vld [vmem:[%s467_s4 + $0x70] sm:$0xff]  ;;  %v175_v19 = vld [vmem:[%s466_s5 + $0x68] sm:$0xff] }
   0x7   :  { %v85_v17 = vld [vmem:[%s465_s3 + $0x10] sm:$0xff]  ;;  %v86_v18 = vld [vmem:[%s465_s3 + $0x18] sm:$0xff]  ;;  %178 = vmatpush.msra.mxu0 %v177_v11  ;;  %198 = vmatpush.msra.mxu1 %v160_v12  ;;  %v158_v20 = vld [vmem:[%s467_s4 + $0x68] sm:$0xff] }
   0x8   :  { %57 = vmatpush.msra.mxu2 %v30_v6  ;;  %77 = vmatpush.msra.mxu3 %v31_v7  ;;  %v83_v21 = vld [vmem:[%s465_s3] sm:$0xff]  ;;  %v84_v22 = vld [vmem:[%s465_s3 + $0x8] sm:$0xff]  ;;  %v173_v26 = vld [vmem:[%s466_s5 + $0x58] sm:$0xff] }
   0x9   :  { %247 = vmatmul.msk.f32.vlgmr.msra.gmra.mxu2 %vm38_vm0, %v29_v8  ;;  %248 = vmatmul.msk.f32.vlgmr.msra.gmra.mxu3 %vm38_vm0, %v29_v8  ;;  %v82_v23 = vld [vmem:[%s468_s1] sm:$0xff]  ;;  %v156_v27 = vld [vmem:[%s467_s4 + $0x58] sm:$0xff]  ;;  %v172_v28 = vld [vmem:[%s466_s5 + $0x50] sm:$0xff] }
   0xa   :  { %106 = vmatpush.msrb.mxu2 %v89_v9  ;;  %126 = vmatpush.msrb.mxu3 %v90_v10  ;;  %v174_v24 = vld [vmem:[%s466_s5 + $0x60] sm:$0xff]  ;;  %v155_v29 = vld [vmem:[%s467_s4 + $0x50] sm:$0xff]  ;;  %v171_v30 = vld [vmem:[%s466_s5 + $0x48] sm:$0xff] }
   0xb   :  { %179 = vmatpush.msra.mxu0 %v176_v15  ;;  %199 = vmatpush.msra.mxu1 %v159_v16  ;;  %v157_v25 = vld [vmem:[%s467_s4 + $0x60] sm:$0xff]  ;;  %v154_v31 = vld [vmem:[%s467_s4 + $0x48] sm:$0xff]  ;;  %v169_v34 = vld [vmem:[%s466_s5 + $0x38] sm:$0xff] }
   0xc   :  { %107 = vmatpush.msrb.mxu2 %v87_v13  ;;  %127 = vmatpush.msrb.mxu3 %v88_v14  ;;  %v170_v32 = vld [vmem:[%s466_s5 + $0x40] sm:$0xff]  ;;  %v152_v35 = vld [vmem:[%s467_s4 + $0x38] sm:$0xff]  ;;  %v168_v36 = vld [vmem:[%s466_s5 + $0x30] sm:$0xff] }
   0xd   :  { %180 = vmatpush.msra.mxu0 %v175_v19  ;;  %200 = vmatpush.msra.mxu1 %v158_v20  ;;  %v153_v33 = vld [vmem:[%s467_s4 + $0x40] sm:$0xff]  ;;  %v151_v37 = vld [vmem:[%s467_s4 + $0x30] sm:$0xff]  ;;  %v167_v38 = vld [vmem:[%s466_s5 + $0x28] sm:$0xff] }
   0xe   :  { %108 = vmatpush.msrb.mxu2 %v85_v17  ;;  %128 = vmatpush.msrb.mxu3 %v86_v18  ;;  %v150_v39 = vld [vmem:[%s467_s4 + $0x28] sm:$0xff]  ;;  %v166_v40 = vld [vmem:[%s466_s5 + $0x20] sm:$0xff]  ;;  %v165_v42 = vld [vmem:[%s466_s5 + $0x18] sm:$0xff] }
   0xf   :  { %181 = vmatpush.msra.mxu0 %v174_v24  ;;  %201 = vmatpush.msra.mxu1 %v157_v25  ;;  %v149_v41 = vld [vmem:[%s467_s4 + $0x20] sm:$0xff]  ;;  %v148_v43 = vld [vmem:[%s467_s4 + $0x18] sm:$0xff]  ;;  %v164_v44 = vld [vmem:[%s466_s5 + $0x10] sm:$0xff] }
  0x10   :  { %109 = vmatpush.msrb.mxu2 %v83_v21  ;;  %129 = vmatpush.msrb.mxu3 %v84_v22  ;;  %v147_v45 = vld [vmem:[%s467_s4 + $0x10] sm:$0xff]  ;;  %v163_v46 = vld [vmem:[%s466_s5 + $0x8] sm:$0xff]  ;;  %v162_v48 = vld [vmem:[%s466_s5] sm:$0xff] }
  0x11   :  { %249 = vmatmul.msk.f32.vlgmr.msrb.gmra.mxu2 %vm38_vm0, %v82_v23  ;;  %250 = vmatmul.msk.f32.vlgmr.msrb.gmra.mxu3 %vm38_vm0, %v82_v23  ;;  %v146_v47 = vld [vmem:[%s467_s4 + $0x8] sm:$0xff]  ;;  %v145_v49 = vld [vmem:[%s467_s4] sm:$0xff] }
  0x12   :  { %182 = vmatpush.msra.mxu0 %v173_v26  ;;  %202 = vmatpush.msra.mxu1 %v156_v27  ;;  %v231_v11 = vld [vmem:[%s469_s7] sm:$0xff] }
  0x14   :  { %183 = vmatpush.msra.mxu0 %v172_v28  ;;  %203 = vmatpush.msra.mxu1 %v155_v29 }
  0x16   :  { %184 = vmatpush.msra.mxu0 %v171_v30  ;;  %204 = vmatpush.msra.mxu1 %v154_v31 }
  0x18   :  { %185 = vmatpush.msra.mxu0 %v170_v32  ;;  %205 = vmatpush.msra.mxu1 %v153_v33 }
  0x1a   :  { %186 = vmatpush.msra.mxu0 %v169_v34  ;;  %206 = vmatpush.msra.mxu1 %v152_v35 }
  0x1c   :  { %187 = vmatpush.msra.mxu0 %v168_v36  ;;  %207 = vmatpush.msra.mxu1 %v151_v37 }
  0x1e   :  { %188 = vmatpush.msra.mxu0 %v167_v38  ;;  %208 = vmatpush.msra.mxu1 %v150_v39 }
  0x20   :  { %189 = vmatpush.msra.mxu0 %v166_v40  ;;  %209 = vmatpush.msra.mxu1 %v149_v41 }
  0x22   :  { %190 = vmatpush.msra.mxu0 %v165_v42  ;;  %210 = vmatpush.msra.mxu1 %v148_v43 }
  0x24   :  { %191 = vmatpush.msra.mxu0 %v164_v44  ;;  %211 = vmatpush.msra.mxu1 %v147_v45 }
  0x26   :  { %192 = vmatpush.msra.mxu0 %v163_v46  ;;  %212 = vmatpush.msra.mxu1 %v146_v47 }
  0x28   :  { %193 = vmatpush.msra.mxu0 %v162_v48  ;;  %213 = vmatpush.msra.mxu1 %v145_v49 }
  0x8c   :  { %v59_v50 = vpop.f32.mrf.mxu2  ;;  %v79_v51 = vpop.f32.mrf.mxu3 }
  0x94   :  { %v111_v52 = vpop.f32.mrf.mxu2  ;;  %v131_v53 = vpop.f32.mrf.mxu3 }
  0x95   :  { %v134_v54 = vmul.f32 %v111_v52, %v59_v50  ;;  %v139_v55 = vmul.f32 %v111_v52, %v79_v51  ;;  %v135_v56 = vmul.f32 %v131_v53, %v79_v51  ;;  %v138_v57 = vmul.f32 %v131_v53, %v59_v50 }
  0x97   :  { %v140_v58 = vadd.f32 %v139_v55, %v138_v57  ;;  %v136_v59 = vsub.f32 %v134_v54, %v135_v56 }
  0x99   :  { %194 = vmatmul.f32.vlgmr.msra.gmra.mxu0 %v140_v58  ;;  %214 = vmatmul.f32.vlgmr.msra.gmra.mxu1 %v136_v59 }
 0x116   :  { %v195_v61 = vpop.f32.mrf.mxu0  ;;  %v215_v62 = vpop.f32.mrf.mxu1 }
 0x117   :  { %v216_v63 = vadd.f32 %v215_v62, %v195_v61 }
 0x119   :  { %v218_v0 = vand.u32 2147483647, %v216_v63 }
 0x11b   :  { %v219_v1 = vadd.f32 1e-12, %v218_v0 }
 0x11d   :  { %252 = vrsqrt.f32 %v219_v1  ;;  %vm226_vm3 = vweird.f32 %v219_v1 }
 0x123   :  { %v253_v2 = vpop.eup %252 }
 0x124   :  { %v221_v3 = vmul.f32 %v253_v2, %v219_v1  ;;  %vm227_vm2 = vweird.f32 %v253_v2 }
 0x125   :  { %vm228_vm4 = vmor %vm226_vm3, %vm227_vm2 }
 0x126   :  { %v222_v4 = vmul.f32 %v253_v2, %v221_v3 }
 0x128   :  { %v223_v5 = vmul.f32 0.5, %v222_v4 }
 0x12a   :  { %v224_v6 = vsub.f32 1.5, %v223_v5 }
 0x12c   :  { %v225_v7 = vmul.f32 %v253_v2, %v224_v6 }
 0x12e   :  { %v229_v8 = vsel %vm228_vm4, %v253_v2, %v225_v7 }
 0x12f   :  { %v230_v9 = vmul.f32 %v229_v8, %v216_v63 }
 0x131   :  { %v232_v10 = vmul.f32 %v230_v9, %v230_v9  ;;  %238 = vst [vmem:[%s470_s6] sm:$0xff] %v230_v9 }
 0x133   :  { %233 = vadd.xlane.f32.xlu0 %v232_v10 }
 0x1a6   :  { %v234_v12 = vpop.xlane.xlu0 %233 }
 0x1a7   :  { %v235_v13 = vadd.f32 %v234_v12, %v231_v11 }
 0x1a9   :  { %237 = vst.msk [vmem:[%s469_s7] sm:$0xff] %vm142_vm1, %v235_v13 }

</bundles_post_ra>
